<compile_context>
chip_gen: v5e
topology: v5e:2x2
jax: 0.10.0
libtpu: 0.0.40
codegen_flags: <defaults>
</compile_context>

<pallas_src>
import jax
import jax.numpy as jnp
from jax.experimental import pallas as pl
from jax.experimental.pallas import tpu as pltpu


def _seg_proj_kernel(x_ref, w_ref, b_ref, o_ref):
    # x_ref: (tm, K), w_ref: (K, N), b_ref: (1, N), o_ref: (tm, N)
    y = jnp.dot(x_ref[...], w_ref[...], preferred_element_type=jnp.float32)
    y = y + b_ref[...]                      # bias broadcast over rows (VPU)
    o_ref[...] = jnp.maximum(y, 0.0).astype(o_ref.dtype)


def _round_up(x, m):
    return pl.cdiv(x, m) * m


def segment_projection(x, weight, bias, num_segments, window_length, *,
                       tm_target=2048):
    """x: [..., input_length] with input_length == num_segments * window_length.

    weight: (hidden_dim, window_length)  -- PyTorch nn.Linear layout
    bias:   (hidden_dim,)
    Returns [-1, num_segments, hidden_dim] (leading dims flattened, matching
    the PyTorch module's forward).
    """
    hidden_dim = weight.shape[0]
    S, W, H = num_segments, window_length, hidden_dim
    if x.shape[-1] != S * W:
        raise ValueError(
            f"last dim of x ({x.shape[-1]}) != num_segments*window_length ({S * W})")

    K = S * W   # lane-dense input width (segments folded into lanes)
    N = S * H   # lane-dense output width

    # ---- plain-JAX glue: flatten rows, build block-diagonal weight ----
    x2d = x.reshape((-1, K))                                   # (M, K)
    M = x2d.shape[0]

    # W_big[s*W + w, s*H + h] = weight[h, w]  (block-diagonal, zeros elsewhere)
    w_big = jnp.kron(jnp.eye(S, dtype=weight.dtype), jnp.transpose(weight))  # (K, N)
    b_big = jnp.tile(bias, S).reshape((1, N))                                # (1, N)

    # ---- row tiling: big double-buffered tiles, pad rows to a tile multiple ----
    M8 = int(_round_up(M, 8))                       # sublane-aligned row count
    tm = min(int(tm_target), M8)                    # tile <= padded row count
    grid_m = int(pl.cdiv(M8, tm))
    M_pad = grid_m * tm
    if M_pad != M:
        x2d = jnp.pad(x2d, ((0, M_pad - M), (0, 0)))  # padded rows sliced off below

    out = pl.pallas_call(
        _seg_proj_kernel,
        out_shape=jax.ShapeDtypeStruct((M_pad, N), x.dtype),
        grid=(grid_m,),
        in_specs=[
            pl.BlockSpec((tm, K), lambda i: (i, 0)),    # streamed row tiles
            pl.BlockSpec((K, N), lambda i: (0, 0)),     # weight: VMEM-resident
            pl.BlockSpec((1, N), lambda i: (0, 0)),     # bias:   VMEM-resident
        ],
        out_specs=pl.BlockSpec((tm, N), lambda i: (i, 0)),
        compiler_params=pltpu.CompilerParams(
            dimension_semantics=("parallel",)),          # v7x: rows split over 2 TCs
    )(x2d, w_big, b_big)

    out = out[:M]                                        # drop padded rows
    return out.reshape((-1, S, H))


if __name__ == "__main__":
    # Module config
    num_segments = 8
    window_length = 32
    hidden_dim = 32

    # Deterministic parameter init (synthetic weights, PyTorch Linear shapes).
    kp = jax.random.PRNGKey(0)
    k_w, k_b, k_x = jax.random.split(kp, 3)
    bound = 1.0 / (window_length ** 0.5)
    weight = jax.random.uniform(k_w, (hidden_dim, window_length),
                                jnp.float32, -bound, bound)
    bias = jax.random.uniform(k_b, (hidden_dim,), jnp.float32, -bound, bound)

    # Example input: batch=2, input_length = num_segments * window_length = 256
    batch = 2
    x = jax.random.normal(k_x, (batch, num_segments * window_length), jnp.float32)

    y = segment_projection(x, weight, bias, num_segments, window_length)
    y = jax.block_until_ready(y)

    # Reference check in plain JAX (same math as the PyTorch module).
    x_r = x.reshape((-1, num_segments, window_length))
    ref = jnp.maximum(
        jnp.einsum("bsw,hw->bsh", x_r, weight,
                   precision=jax.lax.Precision.HIGHEST) + bias, 0.0)
    assert y.shape == (batch, num_segments, hidden_dim), y.shape
    assert jnp.allclose(y, ref, atol=1e-4, rtol=1e-5), "mismatch vs reference"

    print("KERNEL_OK")
</pallas_src>

<mosaic_0001>
module attributes {stable_mosaic.version = 11 : i64} {
  func.func @_seg_proj_kernel(%arg0: i32, %arg1: memref<8x256xf32, #tpu.memory_space<vmem>>, %arg2: memref<256x256xf32, #tpu.memory_space<vmem>>, %arg3: memref<1x256xf32, #tpu.memory_space<vmem>>, %arg4: memref<8x256xf32, #tpu.memory_space<vmem>>) attributes {dimension_semantics = [#tpu.dimension_semantics<parallel>], iteration_bounds = array<i64: 1>, scalar_prefetch = 0 : i64, scratch_operands = 0 : i64, tpu.core_type = #tpu.core_type<tc>, window_params = [{transform_indices = @transform_0, window_bounds = array<i64: 8, 256>}, {pipeline_mode = #tpu.pipeline_mode<synchronous>, transform_indices = @transform_1, window_bounds = array<i64: 256, 256>}, {pipeline_mode = #tpu.pipeline_mode<synchronous>, transform_indices = @transform_2, window_bounds = array<i64: 1, 256>}, {transform_indices = @transform_3, window_bounds = array<i64: 8, 256>}]} {
    %c0 = arith.constant 0 : index
    %c0_0 = arith.constant 0 : index
    %0 = vector.load %arg1[%c0, %c0_0] : memref<8x256xf32, #tpu.memory_space<vmem>>, vector<8x256xf32>
    %c0_1 = arith.constant 0 : index
    %c0_2 = arith.constant 0 : index
    %1 = vector.load %arg2[%c0_1, %c0_2] : memref<256x256xf32, #tpu.memory_space<vmem>>, vector<256x256xf32>
    %cst = arith.constant dense<0.000000e+00> : vector<8x256xf32>
    %2 = tpu.matmul %0, %1, %cst {dimension_numbers = #tpu.dot_dimension_numbers<[1], [0], [0], [1], [0, 0, 1, 1], [], []>} : vector<8x256xf32>, vector<256x256xf32>, vector<8x256xf32> -> vector<8x256xf32>
    %c0_3 = arith.constant 0 : index
    %c0_4 = arith.constant 0 : index
    %3 = vector.load %arg3[%c0_3, %c0_4] : memref<1x256xf32, #tpu.memory_space<vmem>>, vector<1x256xf32>
    %4 = vector.broadcast %3 : vector<1x256xf32> to vector<8x256xf32>
    %5 = arith.addf %2, %4 : vector<8x256xf32>
    %cst_5 = arith.constant 0.000000e+00 : f32
    %6 = vector.broadcast %cst_5 : f32 to vector<8x256xf32>
    %7 = arith.maximumf %5, %6 : vector<8x256xf32>
    %c0_6 = arith.constant 0 : index
    %c0_7 = arith.constant 0 : index
    %8 = vector.load %arg4[%c0_6, %c0_7] : memref<8x256xf32, #tpu.memory_space<vmem>>, vector<8x256xf32>
    tpu.vector_store %arg4[%c0_6, %c0_7], %7 {strides = array<i32>} : memref<8x256xf32, #tpu.memory_space<vmem>>, vector<8x256xf32>,
    return
  }
  func.func @transform_0(%arg0: i32) -> (i32, i32) {
    %c0_i32 = arith.constant 0 : i32
    %c0_i32_0 = arith.constant 0 : i32
    return %arg0, %c0_i32 : i32, i32
  }
  func.func @transform_1(%arg0: i32) -> (i32, i32) {
    %c0_i32 = arith.constant 0 : i32
    %c0_i32_0 = arith.constant 0 : i32
    %c0_i32_1 = arith.constant 0 : i32
    return %c0_i32, %c0_i32_0 : i32, i32
  }
  func.func @transform_2(%arg0: i32) -> (i32, i32) {
    %c0_i32 = arith.constant 0 : i32
    %c0_i32_0 = arith.constant 0 : i32
    %c0_i32_1 = arith.constant 0 : i32
    return %c0_i32, %c0_i32_0 : i32, i32
  }
  func.func @transform_3(%arg0: i32) -> (i32, i32) {
    %c0_i32 = arith.constant 0 : i32
    %c0_i32_0 = arith.constant 0 : i32
    return %arg0, %c0_i32 : i32, i32
  }
}

</mosaic_0001>

<bundles_post_ra>
// kernel: tpu_custom_call.1
= control target key start
LH: loop header
LB: loop body
LE: loop exit
PB: predicated region body
PF: predicated region fallthrough
CT: control target
= control target key end

     0   :  { %8 = vsyncpa [#allocation3], 0  ;;  %s378_s0 = inlined_call_operand.hbm [shape: f32[8,256], index: 0, kind: input, shape index: {}]   ;;  %s379_s1 = inlined_call_operand.hbm [shape: f32[256,256], index: 1, kind: input, shape index: {}]   ;;  %s380_s2 = inlined_call_operand.hbm [shape: f32[1,256], index: 2, kind: input, shape index: {}]   ;;  %s381_s3 = inlined_call_operand.hbm [shape: f32[8,256], index: 3, kind: output, shape index: {}]  }
   0x1   :  { %9 = vsyncpa [#allocation6], 0  ;;  %s26_s14 = sshll.u32 %s379_s1, 4  ;;  %s27_s14 = int_to_ptr.hbm [resolvable:$true] %s26_s14 }
   0x2   :  { %10 = vsyncpa [#allocation4], 0  ;;  %s340_s15 = smov [#allocation5]   ;;  %s16_s19 = sshll.u32 %s378_s0, 4  ;;  %s17_s19 = int_to_ptr.hbm [resolvable:$true] %s16_s19 }
   0x3   :  { %s28_s16 = sshll.u32 %s340_s15, 4  ;;  %s341_s20 = smov 256   ;;  %s29_s16 = int_to_ptr.vmem [resolvable:$true] %s28_s16 }
   0x4   :  { %s342_s21 = smov 16   ;;  %s343_s22 = smov [#allocation2]  }
   0x5   :  { %34 = dma.hbm_to_vmem [thread:$0]  %s27_s14, 8192, %s29_s16, [#allocation6], %s341_s20, %s341_s20, %s342_s21  }
   0x6   :  { %s18_s23 = sshll.u32 %s343_s22, 4  ;;  %s40_s26 = sshll.u32 %s380_s2, 4  ;;  %s19_s23 = int_to_ptr.vmem [resolvable:$true] %s18_s23  ;;  %s41_s26 = int_to_ptr.hbm [resolvable:$true] %s40_s26 }
   0x7   :  { %21 = dma.hbm_to_vmem [thread:$0]  %s17_s19, 256, %s19_s23, [#allocation3]  }
   0x8   :  { %s344_s1 = smov [#allocation7]  }
   0x9   :  { %s42_s27 = sshll.u32 %s344_s1, 4  ;;  %s43_s27 = int_to_ptr.vmem [resolvable:$true] %s42_s27 }
   0xa   :  { %45 = dma.hbm_to_vmem [thread:$0]  %s41_s26, 32, %s43_s27, [#allocation6]  }
   0xb   :  { %334 = dma.done.wait [#allocation3], 256  }
   0xc   :  { %335 = vsyncadd [#allocation3], 4294967040 }
   0xd   :  { %336 = dma.done.wait [#allocation6], 8224  }
   0xe   :  { %337 = vsyncadd [#allocation6], 4294959072  ;;  %v91_v0 = vld [vmem:[#allocation5 + $0xf8] sm:$0xff]  ;;  %v89_v1 = vld [vmem:[#allocation5 + $0xe8] sm:$0xff]  ;;  %s345_s0 = smov [#allocation8]   ;;  %s221_s30 = sshll.u32 %s381_s3, 4  ;;  %s222_s30 = int_to_ptr.hbm [resolvable:$true] %s221_s30 }
   0xf   :  { %v123_v2 = vld [vmem:[#allocation5 + $0x1f8] sm:$0xff]  ;;  %170 = vmatpush.msra.mxu2 %v91_v0  ;;  %v121_v3 = vld [vmem:[#allocation5 + $0x1e8] sm:$0xff]  ;;  %v90_v4 = vld [vmem:[#allocation5 + $0xf0] sm:$0xff]  ;;  %s219_s2 = sshll.u32 %s345_s0, 4  ;;  %s220_s2 = int_to_ptr.vmem [resolvable:$true] %s219_s2 }
  0x10   :  { %190 = vmatpush.msra.mxu3 %v123_v2  ;;  %v87_v5 = vld [vmem:[#allocation5 + $0xd8] sm:$0xff]  ;;  %130 = vmatpush.msra.mxu0 %v90_v4  ;;  %v88_v7 = vld [vmem:[#allocation5 + $0xe0] sm:$0xff]  ;;  %v85_v8 = vld [vmem:[#allocation5 + $0xc8] sm:$0xff] }
  0x11   :  { %v119_v6 = vld [vmem:[#allocation5 + $0x1d8] sm:$0xff]  ;;  %171 = vmatpush.msra.mxu2 %v89_v1  ;;  %v122_v9 = vld [vmem:[#allocation5 + $0x1f0] sm:$0xff]  ;;  %v117_v10 = vld [vmem:[#allocation5 + $0x1c8] sm:$0xff] }
  0x12   :  { %191 = vmatpush.msra.mxu3 %v121_v3  ;;  %131 = vmatpush.msra.mxu0 %v88_v7  ;;  %v86_v11 = vld [vmem:[#allocation5 + $0xd0] sm:$0xff]  ;;  %v120_v12 = vld [vmem:[#allocation5 + $0x1e0] sm:$0xff]  ;;  %v83_v15 = vld [vmem:[#allocation5 + $0xb8] sm:$0xff] }
  0x13   :  { %150 = vmatpush.msra.mxu1 %v122_v9  ;;  %172 = vmatpush.msra.mxu2 %v87_v5  ;;  %v84_v13 = vld [vmem:[#allocation5 + $0xc0] sm:$0xff]  ;;  %v118_v14 = vld [vmem:[#allocation5 + $0x1d0] sm:$0xff]  ;;  %v115_v16 = vld [vmem:[#allocation5 + $0x1b8] sm:$0xff] }
  0x14   :  { %192 = vmatpush.msra.mxu3 %v119_v6  ;;  %132 = vmatpush.msra.mxu0 %v86_v11  ;;  %v82_v17 = vld [vmem:[#allocation5 + $0xb0] sm:$0xff]  ;;  %v116_v18 = vld [vmem:[#allocation5 + $0x1c0] sm:$0xff]  ;;  %v81_v19 = vld [vmem:[#allocation5 + $0xa8] sm:$0xff] }
  0x15   :  { %151 = vmatpush.msra.mxu1 %v120_v12  ;;  %173 = vmatpush.msra.mxu2 %v85_v8  ;;  %v113_v20 = vld [vmem:[#allocation5 + $0x1a8] sm:$0xff]  ;;  %v80_v21 = vld [vmem:[#allocation5 + $0xa0] sm:$0xff]  ;;  %v114_v22 = vld [vmem:[#allocation5 + $0x1b0] sm:$0xff] }
  0x16   :  { %193 = vmatpush.msra.mxu3 %v117_v10  ;;  %133 = vmatpush.msra.mxu0 %v84_v13  ;;  %v79_v23 = vld [vmem:[#allocation5 + $0x98] sm:$0xff]  ;;  %v78_v25 = vld [vmem:[#allocation5 + $0x90] sm:$0xff]  ;;  %v112_v26 = vld [vmem:[#allocation5 + $0x1a0] sm:$0xff] }
  0x17   :  { %152 = vmatpush.msra.mxu1 %v118_v14  ;;  %174 = vmatpush.msra.mxu2 %v83_v15  ;;  %v111_v24 = vld [vmem:[#allocation5 + $0x198] sm:$0xff]  ;;  %v77_v27 = vld [vmem:[#allocation5 + $0x88] sm:$0xff]  ;;  %v76_v29 = vld [vmem:[#allocation5 + $0x80] sm:$0xff] }
  0x18   :  { %194 = vmatpush.msra.mxu3 %v115_v16  ;;  %134 = vmatpush.msra.mxu0 %v82_v17  ;;  %v109_v28 = vld [vmem:[#allocation5 + $0x188] sm:$0xff]  ;;  %v110_v30 = vld [vmem:[#allocation5 + $0x190] sm:$0xff]  ;;  %v75_v31 = vld [vmem:[#allocation5 + $0x78] sm:$0xff] }
  0x19   :  { %153 = vmatpush.msra.mxu1 %v116_v18  ;;  %175 = vmatpush.msra.mxu2 %v81_v19  ;;  %v107_v32 = vld [vmem:[#allocation5 + $0x178] sm:$0xff]  ;;  %v74_v33 = vld [vmem:[#allocation5 + $0x70] sm:$0xff]  ;;  %v108_v34 = vld [vmem:[#allocation5 + $0x180] sm:$0xff] }
  0x1a   :  { %195 = vmatpush.msra.mxu3 %v113_v20  ;;  %135 = vmatpush.msra.mxu0 %v80_v21  ;;  %v73_v35 = vld [vmem:[#allocation5 + $0x68] sm:$0xff]  ;;  %v72_v37 = vld [vmem:[#allocation5 + $0x60] sm:$0xff]  ;;  %v106_v38 = vld [vmem:[#allocation5 + $0x170] sm:$0xff] }
  0x1b   :  { %154 = vmatpush.msra.mxu1 %v114_v22  ;;  %176 = vmatpush.msra.mxu2 %v79_v23  ;;  %v105_v36 = vld [vmem:[#allocation5 + $0x168] sm:$0xff]  ;;  %v71_v39 = vld [vmem:[#allocation5 + $0x58] sm:$0xff]  ;;  %v70_v41 = vld [vmem:[#allocation5 + $0x50] sm:$0xff] }
  0x1c   :  { %196 = vmatpush.msra.mxu3 %v111_v24  ;;  %136 = vmatpush.msra.mxu0 %v78_v25  ;;  %v103_v40 = vld [vmem:[#allocation5 + $0x158] sm:$0xff]  ;;  %v104_v42 = vld [vmem:[#allocation5 + $0x160] sm:$0xff]  ;;  %v69_v43 = vld [vmem:[#allocation5 + $0x48] sm:$0xff] }
  0x1d   :  { %155 = vmatpush.msra.mxu1 %v112_v26  ;;  %177 = vmatpush.msra.mxu2 %v77_v27  ;;  %v101_v44 = vld [vmem:[#allocation5 + $0x148] sm:$0xff]  ;;  %v68_v45 = vld [vmem:[#allocation5 + $0x40] sm:$0xff]  ;;  %v102_v46 = vld [vmem:[#allocation5 + $0x150] sm:$0xff] }
  0x1e   :  { %197 = vmatpush.msra.mxu3 %v109_v28  ;;  %137 = vmatpush.msra.mxu0 %v76_v29  ;;  %v67_v47 = vld [vmem:[#allocation5 + $0x38] sm:$0xff]  ;;  %v66_v49 = vld [vmem:[#allocation5 + $0x30] sm:$0xff]  ;;  %v100_v50 = vld [vmem:[#allocation5 + $0x140] sm:$0xff] }
  0x1f   :  { %156 = vmatpush.msra.mxu1 %v110_v30  ;;  %178 = vmatpush.msra.mxu2 %v75_v31  ;;  %v99_v48 = vld [vmem:[#allocation5 + $0x138] sm:$0xff]  ;;  %v65_v51 = vld [vmem:[#allocation5 + $0x28] sm:$0xff]  ;;  %v64_v53 = vld [vmem:[#allocation5 + $0x20] sm:$0xff] }
  0x20   :  { %198 = vmatpush.msra.mxu3 %v107_v32  ;;  %138 = vmatpush.msra.mxu0 %v74_v33  ;;  %v97_v52 = vld [vmem:[#allocation5 + $0x128] sm:$0xff]  ;;  %v98_v54 = vld [vmem:[#allocation5 + $0x130] sm:$0xff]  ;;  %v63_v55 = vld [vmem:[#allocation5 + $0x18] sm:$0xff] }
  0x21   :  { %157 = vmatpush.msra.mxu1 %v108_v34  ;;  %179 = vmatpush.msra.mxu2 %v73_v35  ;;  %v95_v56 = vld [vmem:[#allocation5 + $0x118] sm:$0xff]  ;;  %v62_v57 = vld [vmem:[#allocation5 + $0x10] sm:$0xff]  ;;  %v96_v58 = vld [vmem:[#allocation5 + $0x120] sm:$0xff] }
  0x22   :  { %199 = vmatpush.msra.mxu3 %v105_v36  ;;  %139 = vmatpush.msra.mxu0 %v72_v37  ;;  %v61_v59 = vld [vmem:[#allocation5 + $0x8] sm:$0xff]  ;;  %v58_v61 = vld [vmem:[#allocation2] sm:$0xff]  ;;  %v59_v62 = vld [vmem:[#allocation2 + $0x8] sm:$0xff] }
  0x23   :  { %158 = vmatpush.msra.mxu1 %v106_v38  ;;  %180 = vmatpush.msra.mxu2 %v71_v39  ;;  %v93_v60 = vld [vmem:[#allocation5 + $0x108] sm:$0xff]  ;;  %v60_v63 = vld [vmem:[#allocation5] sm:$0xff]  ;;  %v94_v0 = vld [vmem:[#allocation5 + $0x110] sm:$0xff] }
  0x24   :  { %200 = vmatpush.msra.mxu3 %v103_v40  ;;  %140 = vmatpush.msra.mxu0 %v70_v41  ;;  %v92_v1 = vld [vmem:[#allocation5 + $0x100] sm:$0xff] }
  0x25   :  { %159 = vmatpush.msra.mxu1 %v104_v42  ;;  %181 = vmatpush.msra.mxu2 %v69_v43  ;;  %v124_v2 = vld [vmem:[#allocation7] sm:$0x3] }
  0x26   :  { %201 = vmatpush.msra.mxu3 %v101_v44  ;;  %141 = vmatpush.msra.mxu0 %v68_v45  ;;  %v126_v3 = vperm.slane %v124_v2, 0  ;;  %v127_v6 = vperm.slane %v124_v2, 1 }
  0x27   :  { %160 = vmatpush.msra.mxu1 %v102_v46  ;;  %182 = vmatpush.msra.mxu2 %v67_v47 }
  0x28   :  { %202 = vmatpush.msra.mxu3 %v99_v48  ;;  %142 = vmatpush.msra.mxu0 %v66_v49 }
  0x29   :  { %161 = vmatpush.msra.mxu1 %v100_v50  ;;  %183 = vmatpush.msra.mxu2 %v65_v51 }
  0x2a   :  { %203 = vmatpush.msra.mxu3 %v97_v52  ;;  %143 = vmatpush.msra.mxu0 %v64_v53 }
  0x2b   :  { %162 = vmatpush.msra.mxu1 %v98_v54  ;;  %184 = vmatpush.msra.mxu2 %v63_v55 }
  0x2c   :  { %204 = vmatpush.msra.mxu3 %v95_v56  ;;  %144 = vmatpush.msra.mxu0 %v62_v57 }
  0x2d   :  { %163 = vmatpush.msra.mxu1 %v96_v58  ;;  %185 = vmatpush.msra.mxu2 %v61_v59 }
  0x2e   :  { %205 = vmatpush.msra.mxu3 %v93_v60  ;;  %186 = vmatmul.f32.vlgmr.msra.gmra.mxu2 %v58_v61 }
  0x2f   :  { %206 = vmatmul.f32.vlgmr.msra.gmra.mxu3 %v59_v62  ;;  %145 = vmatpush.msra.mxu0 %v60_v63 }
  0x30   :  { %164 = vmatpush.msra.mxu1 %v94_v0  ;;  %146 = vmatmul.f32.vlgmr.msra.gmra.mxu0 %v58_v61 }
  0x32   :  { %165 = vmatpush.msra.mxu1 %v92_v1 }
  0x33   :  { %166 = vmatmul.f32.vlgmr.msra.gmra.mxu1 %v59_v62 }
  0xad   :  { %v147_v4 = vpop.f32.mrf.mxu0 }
  0xae   :  { %v148_v5 = vadd.f32 %v147_v4, %v126_v3 }
  0xb0   :  { %v167_v7 = vpop.f32.mrf.mxu1 }
  0xb1   :  { %v168_v8 = vadd.f32 %v167_v7, %v148_v5  ;;  %v187_v9 = vpop.f32.mrf.mxu2 }
  0xb2   :  { %v207_v10 = vpop.f32.mrf.mxu3  ;;  %v188_v11 = vadd.f32 %v187_v9, %v127_v6 }
  0xb3   :  { %v210_v12 = vmax.f32 %v168_v8, 0.0 }
  0xb4   :  { %v208_v13 = vadd.f32 %v207_v10, %v188_v11 }
  0xb5   :  { %212 = vst [vmem:[#allocation8] sm:$0xff] %v210_v12 }
  0xb6   :  { %v211_v14 = vmax.f32 %v208_v13, 0.0 }
  0xb8   :  { %213 = vst [vmem:[#allocation8 + $0x8] sm:$0xff] %v211_v14 }
  0xb9   :  { %224 = dma.vmem_to_hbm [thread:$0]  %s220_s2, 256, %s222_s30, [#allocation4]  }
  0xba   :  { %338 = dma.done.wait [#allocation4], 256  }
  0xbb   :  { %339 = vsyncadd [#allocation4], 4294967040 }
  0xbc   :  { %229 = vsyncpa [#allocation3], 1 }
  0xbd   :  { %230 = vsyncpa [#allocation6], 1 }
  0xbe   :  { %231 = vsyncpa [#allocation4], 1 }

</bundles_post_ra>
